<compile_context>
chip_gen: v6e
topology: v6e:2x2x1
jax: 0.10.0
libtpu: 0.0.40
codegen_flags: <defaults>
</compile_context>

<pallas_src>
import jax
import jax.numpy as jnp
from jax.experimental import pallas as pl
from jax.experimental.pallas import tpu as pltpu


def _l1_partial_sum_kernel(x_ref, y_ref, o_ref):
    """Accumulate |x - y| tile-wise into a per-core VMEM-resident partial-sum block."""
    t = pl.program_id(1)  # reduction ("arbitrary") axis

    @pl.when(t == 0)
    def _():
        o_ref[...] = jnp.zeros_like(o_ref)

    x = x_ref[...].astype(jnp.float32)   # cast in-register; inputs stay native dtype in HBM
    y = y_ref[...].astype(jnp.float32)
    o_ref[...] += jnp.abs(x - y)


def l1_loss(x, y, *, tile_rows=2048, num_cores=2):
    """mean(|x - y|) over all elements (== nn.L1Loss), computed with a Pallas kernel."""
    assert x.shape == y.shape, "generated_image and target_image must have identical shapes"
    n = x.size
    lanes = 128

    # Tile geometry: lane-dense (rows, 128) slab, row-tiles a multiple of 8.
    tile_rows = max(8, (tile_rows // 8) * 8)
    rows = pl.cdiv(n, lanes)
    tile_rows_eff = min(tile_rows, pl.cdiv(rows, 8) * 8)

    num_tiles = pl.cdiv(rows, tile_rows_eff)
    num_cores_eff = max(1, min(num_cores, num_tiles))  # don't pad tiny inputs onto extra cores
    tiles_padded = pl.cdiv(num_tiles, num_cores_eff) * num_cores_eff
    tiles_per_core = tiles_padded // num_cores_eff
    rows_padded = tiles_padded * tile_rows_eff
    n_pad = rows_padded * lanes - n

    # Flatten in native dtype; pad only if needed (padded zeros contribute 0).
    xf = x.reshape(-1)
    yf = y.reshape(-1)
    if n_pad > 0:
        xf = jnp.pad(xf, (0, n_pad))
        yf = jnp.pad(yf, (0, n_pad))
    xf = xf.reshape(rows_padded, lanes)
    yf = yf.reshape(rows_padded, lanes)

    in_map = lambda c, t: (c * tiles_per_core + t, 0)   # each core streams its own tile range
    out_map = lambda c, t: (c, 0)                       # per-core resident accumulator block

    partial_sums = pl.pallas_call(
        _l1_partial_sum_kernel,
        out_shape=jax.ShapeDtypeStruct((num_cores_eff * tile_rows_eff, lanes), jnp.float32),
        grid_spec=pltpu.PrefetchScalarGridSpec(
            num_scalar_prefetch=0,
            grid=(num_cores_eff, tiles_per_core),
            in_specs=[
                pl.BlockSpec((tile_rows_eff, lanes), in_map),
                pl.BlockSpec((tile_rows_eff, lanes), in_map),
            ],
            out_specs=pl.BlockSpec((tile_rows_eff, lanes), out_map),
        ),
        compiler_params=pltpu.CompilerParams(
            dimension_semantics=("parallel", "arbitrary"),
        ),
    )(xf, yf)

    # One cheap XLA reduction + mean.
    total = jnp.sum(partial_sums, dtype=jnp.float32)
    return total / jnp.float32(n)


def adjusted_perceptual_loss(generated_image, target_image):
    # TODO(synk): VGG19 feature extraction (pretrained, frozen) is not reproducible in a
    # self-contained script; only the nn.L1Loss distance term is implemented here.
    return l1_loss(generated_image, target_image)


if __name__ == "__main__":
    key = jax.random.PRNGKey(0)
    kx, ky = jax.random.split(key)
    # Small NCHW shapes consistent with an image loss.
    x = jax.random.normal(kx, (2, 4, 16, 16), dtype=jnp.float32)
    y = jax.random.normal(ky, (2, 4, 16, 16), dtype=jnp.float32)

    loss = jax.jit(adjusted_perceptual_loss)(x, y)
    jax.block_until_ready(loss)

    # Reference check in plain JAX (nn.L1Loss == mean absolute error).
    ref = jnp.mean(jnp.abs(x - y))
    assert jnp.allclose(loss, ref, rtol=1e-5, atol=1e-6), (loss, ref)

    print("KERNEL_OK")
</pallas_src>

<mosaic_0001>
module attributes {stable_mosaic.version = 11 : i64} {
  func.func @_l1_partial_sum_kernel(%arg0: i32, %arg1: i32, %arg2: memref<16x128xf32, #tpu.memory_space<vmem>>, %arg3: memref<16x128xf32, #tpu.memory_space<vmem>>, %arg4: memref<16x128xf32, #tpu.memory_space<vmem>>) attributes {dimension_semantics = [#tpu.dimension_semantics<parallel>, #tpu.dimension_semantics<arbitrary>], iteration_bounds = array<i64: 1, 1>, scalar_prefetch = 0 : i64, scratch_operands = 0 : i64, tpu.core_type = #tpu.core_type<tc>, window_params = [{transform_indices = @transform_0, window_bounds = array<i64: 16, 128>}, {transform_indices = @transform_1, window_bounds = array<i64: 16, 128>}, {transform_indices = @transform_2, window_bounds = array<i64: 16, 128>}]} {
    %c0_i32 = arith.constant 0 : i32
    %0 = arith.cmpi eq, %arg1, %c0_i32 : i32
    %1 = arith.extui %0 : i1 to i32
    %c0_i32_0 = arith.constant 0 : i32
    %2 = arith.cmpi ne, %1, %c0_i32_0 : i32
    scf.if %2 {
      %cst = arith.constant 0.000000e+00 : f32
      %10 = vector.broadcast %cst : f32 to vector<16x128xf32>
      %c0_8 = arith.constant 0 : index
      %c0_9 = arith.constant 0 : index
      %11 = vector.load %arg4[%c0_8, %c0_9] : memref<16x128xf32, #tpu.memory_space<vmem>>, vector<16x128xf32>
      tpu.vector_store %arg4[%c0_8, %c0_9], %10 {strides = array<i32>} : memref<16x128xf32, #tpu.memory_space<vmem>>, vector<16x128xf32>,
    } else {
    }
    %c0 = arith.constant 0 : index
    %c0_1 = arith.constant 0 : index
    %3 = vector.load %arg2[%c0, %c0_1] : memref<16x128xf32, #tpu.memory_space<vmem>>, vector<16x128xf32>
    %c0_2 = arith.constant 0 : index
    %c0_3 = arith.constant 0 : index
    %4 = vector.load %arg3[%c0_2, %c0_3] : memref<16x128xf32, #tpu.memory_space<vmem>>, vector<16x128xf32>
    %c0_4 = arith.constant 0 : index
    %c0_5 = arith.constant 0 : index
    %5 = vector.load %arg4[%c0_4, %c0_5] : memref<16x128xf32, #tpu.memory_space<vmem>>, vector<16x128xf32>
    %6 = arith.subf %3, %4 : vector<16x128xf32>
    %7 = math.absf %6 : vector<16x128xf32>
    %8 = arith.addf %5, %7 : vector<16x128xf32>
    %c0_6 = arith.constant 0 : index
    %c0_7 = arith.constant 0 : index
    %9 = vector.load %arg4[%c0_6, %c0_7] : memref<16x128xf32, #tpu.memory_space<vmem>>, vector<16x128xf32>
    tpu.vector_store %arg4[%c0_6, %c0_7], %8 {strides = array<i32>} : memref<16x128xf32, #tpu.memory_space<vmem>>, vector<16x128xf32>,
    return
  }
  func.func @transform_0(%arg0: i32, %arg1: i32) -> (i32, i32) {
    %c1_i32 = arith.constant 1 : i32
    %0 = arith.muli %arg0, %c1_i32 : i32
    %1 = arith.addi %0, %arg1 : i32
    %c0_i32 = arith.constant 0 : i32
    %c0_i32_0 = arith.constant 0 : i32
    return %1, %c0_i32 : i32, i32
  }
  func.func @transform_1(%arg0: i32, %arg1: i32) -> (i32, i32) {
    %c1_i32 = arith.constant 1 : i32
    %0 = arith.muli %arg0, %c1_i32 : i32
    %1 = arith.addi %0, %arg1 : i32
    %c0_i32 = arith.constant 0 : i32
    %c0_i32_0 = arith.constant 0 : i32
    return %1, %c0_i32 : i32, i32
  }
  func.func @transform_2(%arg0: i32, %arg1: i32) -> (i32, i32) {
    %c0_i32 = arith.constant 0 : i32
    %c0_i32_0 = arith.constant 0 : i32
    return %arg0, %c0_i32 : i32, i32
  }
}

</mosaic_0001>

<bundles_post_ra>
// kernel: adjusted_perceptual_loss.1
= control target key start
LH: loop header
LB: loop body
LE: loop exit
PB: predicated region body
PF: predicated region fallthrough
CT: control target
= control target key end

     0   :  { %s125_s0 = inlined_call_operand.vmem [shape: f32[16,128], index: 0, kind: input, shape index: {}]   ;;  %s126_s1 = inlined_call_operand.vmem [shape: f32[16,128], index: 1, kind: input, shape index: {}]   ;;  %s127_s2 = inlined_call_operand.vmem [shape: f32[16,128], index: 2, kind: output, shape index: {}]  }
   0x1   :  { %v61_v0 = vld [vmem:[%s125_s0] sm:$0xff]  ;;  %v62_v2 = vld [vmem:[%s125_s0 + $0x8] sm:$0xff] }
   0x2   :  { %v63_v1 = vld [vmem:[%s126_s1] sm:$0xff]  ;;  %v64_v4 = vld [vmem:[%s126_s1 + $0x8] sm:$0xff] }
   0x3   :  { %v67_v3 = vsub.f32 %v61_v0, %v63_v1  ;;  %v68_v5 = vsub.f32 %v62_v2, %v64_v4 }
   0x5   :  { %v69_v6 = vand.u32 2147483647, %v67_v3  ;;  %v70_v7 = vand.u32 2147483647, %v68_v5 }
   0x7   :  { %73 = vst [vmem:[%s127_s2] sm:$0xff] %v69_v6  ;;  %74 = vst [vmem:[%s127_s2 + $0x8] sm:$0xff] %v70_v7 }

</bundles_post_ra>
